<compile_context>
chip_gen: v5e
topology: v5e:2x2
jax: 0.10.0
libtpu: 0.0.40
codegen_flags: <defaults>
</compile_context>

<pallas_src>
import functools

import jax
import jax.numpy as jnp
import numpy as np
from jax import lax
from jax.experimental import pallas as pl
from jax.experimental.pallas import tpu as pltpu

TAU = 0.5          # constructor arg `tau`, fixed deterministically
MODE = "frame"     # constructor arg `mode` default

MAX_BLOCK_ELEMS = 8192 * 128   # 1,048,576 f32 = 4 MiB per pred block
MAX_TC = MAX_BLOCK_ELEMS // 8  # 131,072 : column tiling only beyond this T


def _clipped_mse_kernel(tau, b_total, t_total, need_row_mask, need_col_mask,
                        multi_col, p_ref, g_ref, out_ref):
    """One (tb, tc) block of pred + a (tb, 1) slice of gt -> partial sum."""
    i = pl.program_id(0)                     # row-block axis ("parallel")
    j = pl.program_id(1)                     # column/reduction axis ("arbitrary")
    tb, tc = p_ref.shape

    # label broadcast happens here, across lanes, for free-ish: (tb,1)->(tb,tc)
    d = p_ref[...].astype(jnp.float32) - g_ref[...].astype(jnp.float32)
    sq = d * d
    if tau >= 0.0:
        keep = sq > jnp.float32(tau * tau)   # same mask as |d| > tau, one op less
    else:
        keep = jnp.abs(d) > jnp.float32(tau)
    val = jnp.where(keep, sq, jnp.float32(0.0))

    # Ragged tails: blocks that overhang the true [B, T] extent contain
    # unspecified padding; select 0 there (also kills any NaN/Inf garbage).
    if need_row_mask:
        rows = lax.broadcasted_iota(jnp.int32, (tb, tc), 0) + i * tb
        val = jnp.where(rows < b_total, val, jnp.float32(0.0))
    if need_col_mask:
        cols = lax.broadcasted_iota(jnp.int32, (tb, tc), 1) + j * tc
        val = jnp.where(cols < t_total, val, jnp.float32(0.0))

    block_sum = jnp.sum(val).reshape(1, 1, 1)

    if multi_col:
        # output block is resident across the j (reduction) axis -> accumulate
        @pl.when(j == 0)
        def _init():
            out_ref[...] = jnp.zeros_like(out_ref)
        out_ref[...] += block_sum
    else:
        # fast path: no reduction axis -> no init, no read-modify-write
        out_ref[...] = block_sum


def _choose_tiles(B, T):
    """Returns (tb, tc, row_blocks, col_blocks) for the natural [B, T] layout."""
    if B * T <= MAX_BLOCK_ELEMS:
        return B, T, 1, 1                              # one full-array block
    if T <= MAX_TC:                                    # tile rows only
        tc = T
        tb = max(8, (MAX_BLOCK_ELEMS // T) // 8 * 8)   # sublane-aligned
        tb = min(tb, ((B + 7) // 8) * 8)
        return tb, tc, pl.cdiv(B, tb), 1
    # absurdly long T: tile columns too (lane-aligned tc)
    tc = MAX_TC
    tb = B if B < 8 else 8
    return tb, tc, pl.cdiv(B, tb), pl.cdiv(T, tc)


def _clipped_mean(y_hat_2d, gt_1d, tau):
    """mean( (|y_hat - gt[:,None]| > tau) * (y_hat - gt[:,None])^2 )."""
    B, T = y_hat_2d.shape
    n = B * T
    p = y_hat_2d.astype(jnp.float32)
    g = gt_1d.astype(jnp.float32).reshape(B, 1)        # tiny per-row label

    tb, tc, row_blocks, col_blocks = _choose_tiles(B, T)
    kernel = functools.partial(
        _clipped_mse_kernel, float(tau), B, T,
        B % tb != 0, T % tc != 0, col_blocks > 1)

    partials = pl.pallas_call(
        kernel,
        out_shape=jax.ShapeDtypeStruct((row_blocks, 1, 1), jnp.float32),
        grid_spec=pltpu.PrefetchScalarGridSpec(
            num_scalar_prefetch=0,
            grid=(row_blocks, col_blocks),
            in_specs=[
                pl.BlockSpec((tb, tc), lambda i, j: (i, j)),   # pred: the only big stream
                pl.BlockSpec((tb, 1), lambda i, j: (i, 0)),    # gt: one lane, broadcast in-kernel
            ],
            out_specs=pl.BlockSpec((1, 1, 1), lambda i, j: (i, 0, 0)),
        ),
        compiler_params=pltpu.CompilerParams(
            dimension_semantics=("parallel", "arbitrary")),
        cost_estimate=pl.CostEstimate(
            flops=5 * n,
            transcendentals=0,
            bytes_accessed=(n + B) * 4 + row_blocks * 4),
    )(p, g)

    # combine per-row-block partials; divide by the TRUE element count
    return jnp.sum(partials) * (1.0 / n)


def clipped_mse_loss(pred_score, gt_score, tau=TAU, mode=MODE):
    """ClippedMSELoss.forward with criterion == elementwise MSE."""
    if mode == "utt":
        y_hat = pred_score.mean(axis=1)                       # [B, 1]
        if y_hat.ndim > 1 and y_hat.shape[-1] == 1:           # torch .squeeze(-1)
            y_hat = jnp.squeeze(y_hat, axis=-1)               # [B]
        return _clipped_mean(y_hat[:, None], gt_score, tau)   # [B,1] vs [B]
    # 'frame'
    y_hat = pred_score
    if y_hat.shape[-1] == 1:                                  # torch .squeeze(-1)
        y_hat = jnp.squeeze(y_hat, axis=-1)                   # [B, T]
    return _clipped_mean(y_hat, gt_score, tau)                # label broadcast in-kernel


if __name__ == "__main__":
    key = jax.random.PRNGKey(0)
    k1, k2 = jax.random.split(key)
    # [batch, time, 1] per the module docstring; gt is per-utterance [batch]
    B, T = 2, 256
    pred = jax.random.normal(k1, (B, T, 1), dtype=jnp.float32)
    gt = jax.random.normal(k2, (B,), dtype=jnp.float32)

    loss = clipped_mse_loss(pred, gt)
    loss = jax.block_until_ready(loss)

    # pure-JAX reference of the same forward semantics
    y_hat = pred[..., 0]
    label = jnp.broadcast_to(gt[:, None], (B, T))
    d = y_hat - label
    ref = jnp.mean(jnp.where(jnp.abs(d) > TAU, d * d, 0.0))
    np.testing.assert_allclose(np.asarray(loss), np.asarray(ref),
                               rtol=1e-5, atol=1e-6)
    print("KERNEL_OK")
</pallas_src>

<mosaic_0001>
module attributes {stable_mosaic.version = 11 : i64} {
  func.func @_clipped_mse_kernel(%arg0: i32, %arg1: i32, %arg2: memref<2x256xf32, #tpu.memory_space<vmem>>, %arg3: memref<2x1xf32, #tpu.memory_space<vmem>>, %arg4: memref<1x1x1xf32, #tpu.memory_space<vmem>>) attributes {dimension_semantics = [#tpu.dimension_semantics<parallel>, #tpu.dimension_semantics<arbitrary>], iteration_bounds = array<i64: 1, 1>, scalar_prefetch = 0 : i64, scratch_operands = 0 : i64, tpu.core_type = #tpu.core_type<tc>, window_params = [{transform_indices = @transform_0, window_bounds = array<i64: 2, 256>}, {transform_indices = @transform_1, window_bounds = array<i64: 2, 1>}, {transform_indices = @transform_2, window_bounds = array<i64: 1, 1, 1>}]} {
    %c0 = arith.constant 0 : index
    %c0_0 = arith.constant 0 : index
    %0 = vector.load %arg2[%c0, %c0_0] : memref<2x256xf32, #tpu.memory_space<vmem>>, vector<2x256xf32>
    %c0_1 = arith.constant 0 : index
    %c0_2 = arith.constant 0 : index
    %1 = vector.load %arg3[%c0_1, %c0_2] : memref<2x1xf32, #tpu.memory_space<vmem>>, vector<2x1xf32>
    %2 = vector.broadcast %1 : vector<2x1xf32> to vector<2x256xf32>
    %3 = arith.subf %0, %2 : vector<2x256xf32>
    %4 = arith.mulf %3, %3 : vector<2x256xf32>
    %cst = arith.constant 2.500000e-01 : f32
    %5 = vector.broadcast %cst : f32 to vector<2x256xf32>
    %6 = arith.cmpf ogt, %4, %5 : vector<2x256xf32>
    %cst_3 = arith.constant 0.000000e+00 : f32
    %7 = vector.broadcast %cst_3 : f32 to vector<2x256xf32>
    %8 = arith.select %6, %4, %7 : vector<2x256xi1>, vector<2x256xf32>
    %9 = vector.shape_cast %8 : vector<2x256xf32> to vector<1x2x256xf32>
    %cst_4 = arith.constant dense<0.000000e+00> : vector<1xf32>
    %10 = vector.multi_reduction <add>, %9, %cst_4 [1, 2] : vector<1x2x256xf32> to vector<1xf32>
    %11 = vector.shape_cast %10 : vector<1xf32> to vector<1x1x1xf32>
    %12 = vector.extract %11[0, 0, 0] : f32 from vector<1x1x1xf32>
    %13 = vector.broadcast %12 : f32 to vector<1x1x1xf32>
    %c0_5 = arith.constant 0 : index
    %c0_6 = arith.constant 0 : index
    %c0_7 = arith.constant 0 : index
    %14 = vector.load %arg4[%c0_5, %c0_6, %c0_7] : memref<1x1x1xf32, #tpu.memory_space<vmem>>, vector<1x1x1xf32>
    tpu.vector_store %arg4[%c0_5, %c0_6, %c0_7], %13 {strides = array<i32>} : memref<1x1x1xf32, #tpu.memory_space<vmem>>, vector<1x1x1xf32>,
    return
  }
  func.func @transform_0(%arg0: i32, %arg1: i32) -> (i32, i32) {
    %c0_i32 = arith.constant 0 : i32
    return %arg0, %arg1 : i32, i32
  }
  func.func @transform_1(%arg0: i32, %arg1: i32) -> (i32, i32) {
    %c0_i32 = arith.constant 0 : i32
    %c0_i32_0 = arith.constant 0 : i32
    return %arg0, %c0_i32 : i32, i32
  }
  func.func @transform_2(%arg0: i32, %arg1: i32) -> (i32, i32, i32) {
    %c0_i32 = arith.constant 0 : i32
    %c0_i32_0 = arith.constant 0 : i32
    %c0_i32_1 = arith.constant 0 : i32
    return %arg0, %c0_i32, %c0_i32_0 : i32, i32, i32
  }
}

</mosaic_0001>

<bundles_post_ra>
// kernel: tpu_custom_call.1
= control target key start
LH: loop header
LB: loop body
LE: loop exit
PB: predicated region body
PF: predicated region fallthrough
CT: control target
= control target key end

     0   :  { %7 = vsyncpa [#allocation3], 0  ;;  %s167_s0 = inlined_call_operand.hbm [shape: f32[2,256], index: 0, kind: input, shape index: {}]   ;;  %s168_s1 = inlined_call_operand.vmem [shape: f32[2,1], index: 1, kind: input, shape index: {}]   ;;  %s169_s2 = inlined_call_operand.hbm [shape: f32[1,1,1], index: 2, kind: output, shape index: {}]  }
   0x1   :  { %8 = vsyncpa [#allocation4], 0  ;;  %s14_s11 = sshll.u32 %s167_s0, 4  ;;  %s139_s12 = smov [#allocation2]   ;;  %s15_s11 = int_to_ptr.hbm [resolvable:$true] %s14_s11 }
   0x2   :  { %s16_s13 = sshll.u32 %s139_s12, 4  ;;  %s17_s13 = int_to_ptr.vmem [resolvable:$true] %s16_s13 }
   0x3   :  { %19 = dma.hbm_to_vmem [thread:$0]  %s15_s11, 64, %s17_s13, [#allocation3]  }
   0x4   :  { %135 = dma.done.wait [#allocation3], 64  }
   0x5   :  { %136 = vsyncadd [#allocation3], 4294967232  ;;  %v140_v0 = vmov 0   ;;  %v27_v1 = vld [vmem:[%s168_s1] sm:$0x3]  ;;  %vm47_vm1 = vcmask 1041408  }
   0x6   :  { %86 = vset.pattern.permute.xlu0 %v140_v0  ;;  %v141_v2 = vmov 269488144   ;;  %v26_v6 = vld [vmem:[#allocation2] sm:$0xf]  ;;  %s142_s0 = smov [#allocation5]   ;;  %s70_s18 = sshll.u32 %s169_s2, 4  ;;  %s71_s18 = int_to_ptr.hbm [resolvable:$true] %s70_s18 }
   0x7   :  { %30 = vperm.xlu0 %86, %v27_v1   ;;  %v33_v3 = vunpack.c.l.s4 %v141_v2  ;;  %s68_s1 = sshll.u32 %s142_s0, 4  ;;  %vm61_vm2 = vcmask 0   ;;  %s69_s1 = int_to_ptr.vmem [resolvable:$true] %s68_s1 }
   0x9   :  { %v34_v4 = vunpack.c.0.s8 %v33_v3 }
  0x79   :  { %v31_v5 = vpop.permute.xlu0 %30 }
  0x7a   :  { %v35_v7 = vperm.slane %v31_v5, %v34_v4 }
  0x7c   :  { %v37_v8 = vsub.f32 %v26_v6, %v35_v7 }
  0x7e   :  { %v38_v9 = vmul.f32 %v37_v8, %v37_v8 }
  0x80   :  { %vm39_vm0 = vcmp.gt.f32.partialorder %v38_v9, 0.25 }
  0x81   :  { %v40_v10 = vsel %vm39_vm0, %v38_v9, 0.0 }
  0x82   :  { %42 = vst [vmem:[#allocation1] ss:$4 sm:$0xff] %v40_v10 }
  0x89   :  { %v43_v11 = vld.sshfl [vmem:[#allocation1] sm:$0xff pattern:$0x73625140]  ;;  %v44_v12 = vld.sshfl [vmem:[#allocation1 + $0x8] sm:$0xff pattern:$0x73625140] }
  0x8a   :  { %v48_v13 = vsel %vm47_vm1, %v43_v11, 0.0  ;;  %v49_v14 = vsel %vm47_vm1, %v44_v12, 0.0 }
  0x8b   :  { %v50_v15 = vadd.f32 %v49_v14, %v48_v13 }
  0x8d   :  { %51 = vadd.xlane.f32.xlu0 %v50_v15 }
 0x100   :  { %v52_v16 = vpop.xlane.xlu0 %51 }
 0x101   :  { %v53_v17 = vrot.slane %v52_v16, 4 }
 0x103   :  { %v54_v18 = vadd.f32 %v53_v17, %v52_v16 }
 0x105   :  { %v55_v19 = vrot.slane %v54_v18, 2 }
 0x107   :  { %v56_v20 = vadd.f32 %v55_v19, %v54_v18 }
 0x109   :  { %v57_v21 = vrot.slane %v56_v20, 1 }
 0x10b   :  { %v58_v22 = vadd.f32 %v57_v21, %v56_v20 }
 0x10d   :  { %80 = vpush %v58_v22 }
 0x13e   :  { %s81_s19 = spop %80 }
 0x13f   :  { %v60_v23 = vstv %s81_s19 }
 0x140   :  { %62 = vst.msk [vmem:[#allocation5] sm:$0x1] %vm61_vm2, %v60_v23 }
 0x141   :  { %73 = dma.vmem_to_hbm [thread:$0]  %s69_s1, 16, %s71_s18, [#allocation4]  }
 0x142   :  { %137 = dma.done.wait [#allocation4], 16  }
 0x143   :  { %138 = vsyncadd [#allocation4], 4294967280 }
 0x144   :  { %78 = vsyncpa [#allocation3], 1 }
 0x145   :  { %79 = vsyncpa [#allocation4], 1 }

</bundles_post_ra>
